<compile_context>
chip_gen: v6e
topology: v6e:2x2x1
jax: 0.10.0
libtpu: 0.0.40
codegen_flags: <defaults>
</compile_context>

<pallas_src>
import functools

import jax
import jax.numpy as jnp
from jax.experimental import pallas as pl
from jax.experimental.pallas import tpu as pltpu

LANES = 128          # vreg lane width; batch tiles are multiples of this so the
                     # packed (1, tile_b) output block is always lane-aligned.
TILE_TARGET = 1024   # default rows per grid step (fits easily in scoped VMEM).


def _cdiv(a, b):
    return (a + b - 1) // b


def _round_up(n, m):
    return _cdiv(n, m) * m


def _choose_tiling(B, tile_target):
    """Balanced batch split into lane-aligned tiles; >=2 tiles when possible."""
    num_tiles = max(1, _cdiv(B, tile_target))
    # v7x has 2 TensorCores and the "parallel" grid axis is sharded across
    # them: make sure both get work once the batch exceeds one lane tile.
    if num_tiles < 2 and B > LANES:
        num_tiles = 2
    tile_b = _round_up(_cdiv(B, num_tiles), LANES)
    num_tiles = _cdiv(B, tile_b)          # re-derive if rounding absorbed a tile
    return tile_b, num_tiles


def ffnnb_kernel(x_ref,
                 w1_ref, b1_ref,
                 w2_ref, b2_ref,
                 w3_ref, b3_ref,
                 w4_ref, b4_ref,
                 o_ref):
    """Fused 4-layer MLP forward for one batch tile, entirely in VMEM."""
    x = x_ref[...]

    # Three hidden layers on the MXU with f32 accumulation.
    h = jnp.dot(x, w1_ref[...], preferred_element_type=jnp.float32) + b1_ref[...]
    h = jnp.maximum(h, 0.0)
    h = jnp.dot(h, w2_ref[...], preferred_element_type=jnp.float32) + b2_ref[...]
    h = jnp.maximum(h, 0.0)
    h = jnp.dot(h, w3_ref[...], preferred_element_type=jnp.float32) + b3_ref[...]
    h = jnp.maximum(h, 0.0)

    # Final layer (out_features = 1) against the transposed activations:
    # (1, H) @ (H, tile_b) -> (1, tile_b).  Each batch row's logit lands on a
    # lane, so the epilogue is a single full-width, fully-packed vst instead of
    # a 1-lane masked column or a 128x-broadcast slab.
    z = jnp.dot(w4_ref[...], h.T, preferred_element_type=jnp.float32) + b4_ref[...]
    o_ref[...] = jax.nn.sigmoid(z).astype(o_ref.dtype)          # EUP logistic


@functools.partial(jax.jit, static_argnames=("tile_target",))
def ffnnb_forward(x, params, *, tile_target=TILE_TARGET):
    """x: [B, input_size] f32 -> [B, 1] f32 sigmoid probabilities."""
    w1, b1, w2, b2, w3, b3, w4, b4 = params
    B, F = x.shape
    H = w1.shape[1]

    tile_b, num_tiles = _choose_tiling(B, tile_target)
    B_pad = tile_b * num_tiles
    if B_pad != B:
        x = jnp.pad(x, ((0, B_pad - B), (0, 0)))   # padded rows sliced off below

    # Weights / biases: whole array at block index (0, 0) every step (resident).
    full2d = lambda a: pl.BlockSpec(a.shape, lambda i: (0, 0))

    flops = int(B_pad) * (2 * F * H + 4 * H * H + 2 * H)
    bytes_accessed = 4 * (B_pad * F          # x read
                          + B_pad            # packed output write
                          + F * H + 2 * H * H + 3 * H   # weights + hidden biases
                          + H + 1)                       # w4 row + b4
    cost = pl.CostEstimate(flops=flops,
                           transcendentals=int(B_pad),
                           bytes_accessed=int(bytes_accessed))

    out = pl.pallas_call(
        ffnnb_kernel,
        out_shape=jax.ShapeDtypeStruct((1, B_pad), jnp.float32),
        grid_spec=pltpu.PrefetchScalarGridSpec(
            num_scalar_prefetch=0,
            grid=(num_tiles,),
            in_specs=[
                pl.BlockSpec((tile_b, F), lambda i: (i, 0)),   # x batch tile
                full2d(w1), full2d(b1),
                full2d(w2), full2d(b2),
                full2d(w3), full2d(b3),
                full2d(w4), full2d(b4),
            ],
            # One lane-dense (1, tile_b) strip per grid step.
            out_specs=pl.BlockSpec((1, tile_b), lambda i: (0, i)),
        ),
        compiler_params=pltpu.CompilerParams(
            dimension_semantics=("parallel",)),   # shards steps across v7x's 2 TCs
        cost_estimate=cost,
    )(x, w1, b1, w2, b2, w3, b3, w4, b4)

    # Lane j of the single output row holds batch row j's probability.
    return out[0, :B, None]


def init_ffnnb_params(input_size, hidden_size, key):
    """Deterministic init mimicking nn.Linear's U(-1/sqrt(fan_in), 1/sqrt(fan_in)).
    Hidden weights stored [in, out]; layer-4 weight stored as a (1, hidden) row."""
    def linear(key, fan_in, fan_out):
        kw, kb = jax.random.split(key)
        bound = 1.0 / float(fan_in) ** 0.5
        w = jax.random.uniform(kw, (fan_in, fan_out), jnp.float32, -bound, bound)
        b = jax.random.uniform(kb, (1, fan_out), jnp.float32, -bound, bound)
        return w, b

    k1, k2, k3, k4 = jax.random.split(key, 4)
    w1, b1 = linear(k1, input_size, hidden_size)
    w2, b2 = linear(k2, hidden_size, hidden_size)
    w3, b3 = linear(k3, hidden_size, hidden_size)
    w4, b4 = linear(k4, hidden_size, 1)
    return (w1, b1, w2, b2, w3, b3, w4.T, b4)


def ffnnb_reference(x, params):
    """Pure-JAX reference of the PyTorch forward."""
    w1, b1, w2, b2, w3, b3, w4_row, b4 = params
    h = jnp.maximum(x @ w1 + b1, 0.0)
    h = jnp.maximum(h @ w2 + b2, 0.0)
    h = jnp.maximum(h @ w3 + b3, 0.0)
    return jax.nn.sigmoid(h @ w4_row.T + b4)


if __name__ == "__main__":
    input_size = 32
    hidden_size = 32
    batch = 16

    key = jax.random.PRNGKey(0)
    kx, kp = jax.random.split(key)

    x = jax.random.normal(kx, (batch, input_size), dtype=jnp.float32)
    params = init_ffnnb_params(input_size, hidden_size, kp)

    out = jax.block_until_ready(ffnnb_forward(x, params))
    ref = ffnnb_reference(x, params)

    assert out.shape == (batch, 1), out.shape
    assert jnp.allclose(out, ref, atol=1e-5, rtol=1e-5), "mismatch vs reference"

    # Exercise the multi-tile path (ragged batch, >1 grid step) as well.
    x_big = jax.random.normal(kx, (300, input_size), dtype=jnp.float32)
    out_big = jax.block_until_ready(ffnnb_forward(x_big, params))
    ref_big = ffnnb_reference(x_big, params)
    assert out_big.shape == (300, 1), out_big.shape
    assert jnp.allclose(out_big, ref_big, atol=1e-5, rtol=1e-5), "mismatch (multi-tile)"

    print("KERNEL_OK")
</pallas_src>

<mosaic_0001>
module attributes {stable_mosaic.version = 11 : i64} {
  func.func @ffnnb_kernel(%arg0: i32, %arg1: memref<128x32xf32, #tpu.memory_space<vmem>>, %arg2: memref<32x32xf32, #tpu.memory_space<vmem>>, %arg3: memref<1x32xf32, #tpu.memory_space<vmem>>, %arg4: memref<32x32xf32, #tpu.memory_space<vmem>>, %arg5: memref<1x32xf32, #tpu.memory_space<vmem>>, %arg6: memref<32x32xf32, #tpu.memory_space<vmem>>, %arg7: memref<1x32xf32, #tpu.memory_space<vmem>>, %arg8: memref<1x32xf32, #tpu.memory_space<vmem>>, %arg9: memref<1x1xf32, #tpu.memory_space<vmem>>, %arg10: memref<1x128xf32, #tpu.memory_space<vmem>>) attributes {dimension_semantics = [#tpu.dimension_semantics<parallel>], iteration_bounds = array<i64: 1>, scalar_prefetch = 0 : i64, scratch_operands = 0 : i64, tpu.core_type = #tpu.core_type<tc>, window_params = [{transform_indices = @transform_0, window_bounds = array<i64: 128, 32>}, {pipeline_mode = #tpu.pipeline_mode<synchronous>, transform_indices = @transform_1, window_bounds = array<i64: 32, 32>}, {pipeline_mode = #tpu.pipeline_mode<synchronous>, transform_indices = @transform_2, window_bounds = array<i64: 1, 32>}, {pipeline_mode = #tpu.pipeline_mode<synchronous>, transform_indices = @transform_3, window_bounds = array<i64: 32, 32>}, {pipeline_mode = #tpu.pipeline_mode<synchronous>, transform_indices = @transform_4, window_bounds = array<i64: 1, 32>}, {pipeline_mode = #tpu.pipeline_mode<synchronous>, transform_indices = @transform_5, window_bounds = array<i64: 32, 32>}, {pipeline_mode = #tpu.pipeline_mode<synchronous>, transform_indices = @transform_6, window_bounds = array<i64: 1, 32>}, {pipeline_mode = #tpu.pipeline_mode<synchronous>, transform_indices = @transform_7, window_bounds = array<i64: 1, 32>}, {pipeline_mode = #tpu.pipeline_mode<synchronous>, transform_indices = @transform_8, window_bounds = array<i64: 1, 1>}, {transform_indices = @transform_9, window_bounds = array<i64: 1, 128>}]} {
    %c0 = arith.constant 0 : index
    %c0_0 = arith.constant 0 : index
    %0 = vector.load %arg1[%c0, %c0_0] : memref<128x32xf32, #tpu.memory_space<vmem>>, vector<128x32xf32>
    %c0_1 = arith.constant 0 : index
    %c0_2 = arith.constant 0 : index
    %1 = vector.load %arg2[%c0_1, %c0_2] : memref<32x32xf32, #tpu.memory_space<vmem>>, vector<32x32xf32>
    %cst = arith.constant dense<0.000000e+00> : vector<128x32xf32>
    %2 = tpu.matmul %0, %1, %cst {dimension_numbers = #tpu.dot_dimension_numbers<[1], [0], [0], [1], [0, 0, 1, 1], [], []>} : vector<128x32xf32>, vector<32x32xf32>, vector<128x32xf32> -> vector<128x32xf32>
    %c0_3 = arith.constant 0 : index
    %c0_4 = arith.constant 0 : index
    %3 = vector.load %arg3[%c0_3, %c0_4] : memref<1x32xf32, #tpu.memory_space<vmem>>, vector<1x32xf32>
    %4 = vector.broadcast %3 : vector<1x32xf32> to vector<128x32xf32>
    %5 = arith.addf %2, %4 : vector<128x32xf32>
    %cst_5 = arith.constant 0.000000e+00 : f32
    %6 = vector.broadcast %cst_5 : f32 to vector<128x32xf32>
    %7 = arith.maximumf %5, %6 : vector<128x32xf32>
    %c0_6 = arith.constant 0 : index
    %c0_7 = arith.constant 0 : index
    %8 = vector.load %arg4[%c0_6, %c0_7] : memref<32x32xf32, #tpu.memory_space<vmem>>, vector<32x32xf32>
    %cst_8 = arith.constant dense<0.000000e+00> : vector<128x32xf32>
    %9 = tpu.matmul %7, %8, %cst_8 {dimension_numbers = #tpu.dot_dimension_numbers<[1], [0], [0], [1], [0, 0, 1, 1], [], []>} : vector<128x32xf32>, vector<32x32xf32>, vector<128x32xf32> -> vector<128x32xf32>
    %c0_9 = arith.constant 0 : index
    %c0_10 = arith.constant 0 : index
    %10 = vector.load %arg5[%c0_9, %c0_10] : memref<1x32xf32, #tpu.memory_space<vmem>>, vector<1x32xf32>
    %11 = vector.broadcast %10 : vector<1x32xf32> to vector<128x32xf32>
    %12 = arith.addf %9, %11 : vector<128x32xf32>
    %cst_11 = arith.constant 0.000000e+00 : f32
    %13 = vector.broadcast %cst_11 : f32 to vector<128x32xf32>
    %14 = arith.maximumf %12, %13 : vector<128x32xf32>
    %c0_12 = arith.constant 0 : index
    %c0_13 = arith.constant 0 : index
    %15 = vector.load %arg6[%c0_12, %c0_13] : memref<32x32xf32, #tpu.memory_space<vmem>>, vector<32x32xf32>
    %cst_14 = arith.constant dense<0.000000e+00> : vector<128x32xf32>
    %16 = tpu.matmul %14, %15, %cst_14 {dimension_numbers = #tpu.dot_dimension_numbers<[1], [0], [0], [1], [0, 0, 1, 1], [], []>} : vector<128x32xf32>, vector<32x32xf32>, vector<128x32xf32> -> vector<128x32xf32>
    %c0_15 = arith.constant 0 : index
    %c0_16 = arith.constant 0 : index
    %17 = vector.load %arg7[%c0_15, %c0_16] : memref<1x32xf32, #tpu.memory_space<vmem>>, vector<1x32xf32>
    %18 = vector.broadcast %17 : vector<1x32xf32> to vector<128x32xf32>
    %19 = arith.addf %16, %18 : vector<128x32xf32>
    %cst_17 = arith.constant 0.000000e+00 : f32
    %20 = vector.broadcast %cst_17 : f32 to vector<128x32xf32>
    %21 = arith.maximumf %19, %20 : vector<128x32xf32>
    %c0_18 = arith.constant 0 : index
    %c0_19 = arith.constant 0 : index
    %22 = vector.load %arg8[%c0_18, %c0_19] : memref<1x32xf32, #tpu.memory_space<vmem>>, vector<1x32xf32>
    %23 = tpu.transpose %21, [1, 0] : vector<128x32xf32> -> vector<32x128xf32>
    %cst_20 = arith.constant dense<0.000000e+00> : vector<1x128xf32>
    %24 = tpu.matmul %22, %23, %cst_20 {dimension_numbers = #tpu.dot_dimension_numbers<[1], [0], [0], [1], [0, 0, 1, 1], [], []>} : vector<1x32xf32>, vector<32x128xf32>, vector<1x128xf32> -> vector<1x128xf32>
    %c0_21 = arith.constant 0 : index
    %c0_22 = arith.constant 0 : index
    %25 = vector.load %arg9[%c0_21, %c0_22] : memref<1x1xf32, #tpu.memory_space<vmem>>, vector<1x1xf32>
    %26 = vector.broadcast %25 : vector<1x1xf32> to vector<1x128xf32>
    %27 = arith.addf %24, %26 : vector<1x128xf32>
    %28 = arith.negf %27 : vector<1x128xf32>
    %29 = math.exp %28 : vector<1x128xf32>
    %cst_23 = arith.constant 1.000000e+00 : f32
    %30 = vector.broadcast %cst_23 : f32 to vector<1x128xf32>
    %31 = arith.addf %30, %29 : vector<1x128xf32>
    %32 = arith.divf %30, %31 : vector<1x128xf32>
    %c0_24 = arith.constant 0 : index
    %c0_25 = arith.constant 0 : index
    %33 = vector.load %arg10[%c0_24, %c0_25] : memref<1x128xf32, #tpu.memory_space<vmem>>, vector<1x128xf32>
    tpu.vector_store %arg10[%c0_24, %c0_25], %32 {strides = array<i32>} : memref<1x128xf32, #tpu.memory_space<vmem>>, vector<1x128xf32>,
    return
  }
  func.func @transform_0(%arg0: i32) -> (i32, i32) {
    %c0_i32 = arith.constant 0 : i32
    %c0_i32_0 = arith.constant 0 : i32
    return %arg0, %c0_i32 : i32, i32
  }
  func.func @transform_1(%arg0: i32) -> (i32, i32) {
    %c0_i32 = arith.constant 0 : i32
    %c0_i32_0 = arith.constant 0 : i32
    %c0_i32_1 = arith.constant 0 : i32
    return %c0_i32, %c0_i32_0 : i32, i32
  }
  func.func @transform_2(%arg0: i32) -> (i32, i32) {
    %c0_i32 = arith.constant 0 : i32
    %c0_i32_0 = arith.constant 0 : i32
    %c0_i32_1 = arith.constant 0 : i32
    return %c0_i32, %c0_i32_0 : i32, i32
  }
  func.func @transform_3(%arg0: i32) -> (i32, i32) {
    %c0_i32 = arith.constant 0 : i32
    %c0_i32_0 = arith.constant 0 : i32
    %c0_i32_1 = arith.constant 0 : i32
    return %c0_i32, %c0_i32_0 : i32, i32
  }
  func.func @transform_4(%arg0: i32) -> (i32, i32) {
    %c0_i32 = arith.constant 0 : i32
    %c0_i32_0 = arith.constant 0 : i32
    %c0_i32_1 = arith.constant 0 : i32
    return %c0_i32, %c0_i32_0 : i32, i32
  }
  func.func @transform_5(%arg0: i32) -> (i32, i32) {
    %c0_i32 = arith.constant 0 : i32
    %c0_i32_0 = arith.constant 0 : i32
    %c0_i32_1 = arith.constant 0 : i32
    return %c0_i32, %c0_i32_0 : i32, i32
  }
  func.func @transform_6(%arg0: i32) -> (i32, i32) {
    %c0_i32 = arith.constant 0 : i32
    %c0_i32_0 = arith.constant 0 : i32
    %c0_i32_1 = arith.constant 0 : i32
    return %c0_i32, %c0_i32_0 : i32, i32
  }
  func.func @transform_7(%arg0: i32) -> (i32, i32) {
    %c0_i32 = arith.constant 0 : i32
    %c0_i32_0 = arith.constant 0 : i32
    %c0_i32_1 = arith.constant 0 : i32
    return %c0_i32, %c0_i32_0 : i32, i32
  }
  func.func @transform_8(%arg0: i32) -> (i32, i32) {
    %c0_i32 = arith.constant 0 : i32
    %c0_i32_0 = arith.constant 0 : i32
    %c0_i32_1 = arith.constant 0 : i32
    return %c0_i32, %c0_i32_0 : i32, i32
  }
  func.func @transform_9(%arg0: i32) -> (i32, i32) {
    %c0_i32 = arith.constant 0 : i32
    %c0_i32_0 = arith.constant 0 : i32
    return %c0_i32, %arg0 : i32, i32
  }
}

</mosaic_0001>

<bundles_post_ra>
// kernel: ffnnb_forward.1
= control target key start
LH: loop header
LB: loop body
LE: loop exit
PB: predicated region body
PF: predicated region fallthrough
CT: control target
= control target key end

     0   :  { %vm61_vm0 = vcmask 261120   ;;  %vm1140_vm1 = vmmov 0   ;;  %s1385_s1 = inlined_call_operand.vmem [shape: f32[32,32], index: 1, kind: input, shape index: {}]   ;;  %s1386_s0 = inlined_call_operand.vmem [shape: f32[128,32], index: 0, kind: input, shape index: {}]   ;;  %s1387_s3 = inlined_call_operand.vmem [shape: f32[32,32], index: 3, kind: input, shape index: {}]   ;;  %s1388_s5 = inlined_call_operand.vmem [shape: f32[32,32], index: 5, kind: input, shape index: {}]   ;;  %s1389_s2 = inlined_call_operand.vmem [shape: f32[1,32], index: 2, kind: input, shape index: {}]   ;;  %s1390_s4 = inlined_call_operand.vmem [shape: f32[1,32], index: 4, kind: input, shape index: {}]   ;;  %s1391_s8 = inlined_call_operand.<no memory space> [shape: f32[1,1], index: 8, kind: input, shape index: {}]   ;;  %s1392_s6 = inlined_call_operand.vmem [shape: f32[1,32], index: 6, kind: input, shape index: {}]   ;;  %s1393_s7 = inlined_call_operand.vmem [shape: f32[1,32], index: 7, kind: input, shape index: {}]   ;;  %s1394_s9 = inlined_call_operand.vmem [shape: f32[1,128], index: 9, kind: output, shape index: {}]  }
   0x1   :  { %v53_v0 = vld [vmem:[%s1385_s1 + $0x18] sm:$0xff]  ;;  %v52_v1 = vld [vmem:[%s1385_s1 + $0x10] sm:$0xff]  ;;  %v34_v2 = vld [vmem:[%s1386_s0] sm:$0xff] }
   0x2   :  { %1000 = vmatprep.subr.mxu0 %v53_v0  ;;  %v51_v3 = vld [vmem:[%s1385_s1 + $0x8] sm:$0xff]  ;;  %1008 = vmatprep.mubr.msk.f32.mxu0 %vm61_vm0, %v34_v2  ;;  %v50_v4 = vld [vmem:[%s1385_s1] sm:$0xff]  ;;  %v36_v6 = vld [vmem:[%s1386_s0 + $0x10] sm:$0xff] }
   0x3   :  { %1001 = vmatpush3.msra.mxu0 %v53_v0  ;;  %v35_v5 = vld [vmem:[%s1386_s0 + $0x8] sm:$0xff]  ;;  %v37_v7 = vld [vmem:[%s1386_s0 + $0x18] sm:$0xff]  ;;  %v38_v8 = vld [vmem:[%s1386_s0 + $0x20] sm:$0xff] }
   0x4   :  { %1002 = vmatprep.subr.mxu0 %v52_v1  ;;  %v39_v9 = vld [vmem:[%s1386_s0 + $0x28] sm:$0xff]  ;;  %v40_v10 = vld [vmem:[%s1386_s0 + $0x30] sm:$0xff]  ;;  %v41_v11 = vld [vmem:[%s1386_s0 + $0x38] sm:$0xff] }
   0x5   :  { %1003 = vmatpush3.msra.mxu0 %v52_v1  ;;  %v42_v12 = vld [vmem:[%s1386_s0 + $0x40] sm:$0xff]  ;;  %v43_v13 = vld [vmem:[%s1386_s0 + $0x48] sm:$0xff]  ;;  %v44_v14 = vld [vmem:[%s1386_s0 + $0x50] sm:$0xff] }
   0x6   :  { %1004 = vmatprep.subr.mxu0 %v51_v3  ;;  %v45_v15 = vld [vmem:[%s1386_s0 + $0x58] sm:$0xff]  ;;  %v46_v16 = vld [vmem:[%s1386_s0 + $0x60] sm:$0xff]  ;;  %v47_v17 = vld [vmem:[%s1386_s0 + $0x68] sm:$0xff] }
   0x7   :  { %1005 = vmatpush3.msra.mxu0 %v51_v3  ;;  %v48_v18 = vld [vmem:[%s1386_s0 + $0x70] sm:$0xff]  ;;  %v49_v19 = vld [vmem:[%s1386_s0 + $0x78] sm:$0xff]  ;;  %v272_v22 = vld [vmem:[%s1387_s3 + $0x8] sm:$0xff] }
   0x8   :  { %1006 = vmatprep.subr.mxu0 %v50_v4  ;;  %v274_v20 = vld [vmem:[%s1387_s3 + $0x18] sm:$0xff]  ;;  %v273_v21 = vld [vmem:[%s1387_s3 + $0x10] sm:$0xff]  ;;  %v271_v23 = vld [vmem:[%s1387_s3] sm:$0xff] }
   0x9   :  { %1007 = vmatpush3.msra.mxu0 %v50_v4  ;;  %1032 = vmatprep.subr.mxu1 %v274_v20  ;;  %v494_v24 = vld [vmem:[%s1388_s5 + $0x18] sm:$0xff]  ;;  %v493_v25 = vld [vmem:[%s1388_s5 + $0x10] sm:$0xff]  ;;  %v492_v26 = vld [vmem:[%s1388_s5 + $0x8] sm:$0xff] }
   0xa   :  { %1009 = vmatmul.mubr.msk.f32.vlgmr.msra.gmra.mxu0 %vm61_vm0, %v35_v5  ;;  %1033 = vmatpush3.msra.mxu1 %v274_v20  ;;  %v491_v27 = vld [vmem:[%s1388_s5] sm:$0xff] }
   0xb   :  { %1011 = vmatprep.mubr.msk.f32.mxu0 %vm61_vm0, %v36_v6  ;;  %1034 = vmatprep.subr.mxu1 %v273_v21  ;;  %v854_v28 = vld [vmem:[%s1389_s2] ss:$0 sm:$0xff] }
   0xc   :  { %1035 = vmatpush3.msra.mxu1 %v273_v21  ;;  %1064 = vmatprep.subr.mxu0 %v494_v24 }
   0xd   :  { %1036 = vmatprep.subr.mxu1 %v272_v22  ;;  %1065 = vmatpush3.msra.mxu0 %v494_v24 }
   0xe   :  { %1012 = vmatmul.mubr.msk.f32.gmra.mxu0 %vm61_vm0, %v37_v7  ;;  %1037 = vmatpush3.msra.mxu1 %v272_v22 }
   0xf   :  { %1014 = vmatprep.mubr.msk.f32.mxu0 %vm61_vm0, %v38_v8  ;;  %1038 = vmatprep.subr.mxu1 %v271_v23 }
  0x10   :  { %1039 = vmatpush3.msra.mxu1 %v271_v23  ;;  %1066 = vmatprep.subr.mxu0 %v493_v25 }
  0x11   :  { %1067 = vmatpush3.msra.mxu0 %v493_v25 }
  0x12   :  { %1015 = vmatmul.mubr.msk.f32.gmra.mxu0 %vm61_vm0, %v39_v9  ;;  %1068 = vmatprep.subr.mxu0 %v492_v26 }
  0x13   :  { %1017 = vmatprep.mubr.msk.f32.mxu0 %vm61_vm0, %v40_v10  ;;  %1069 = vmatpush3.msra.mxu0 %v492_v26 }
  0x14   :  { %1070 = vmatprep.subr.mxu0 %v491_v27 }
  0x15   :  { %1071 = vmatpush3.msra.mxu0 %v491_v27 }
  0x16   :  { %1018 = vmatmul.mubr.msk.f32.gmra.mxu0 %vm61_vm0, %v41_v11 }
  0x17   :  { %1020 = vmatprep.mubr.msk.f32.mxu0 %vm61_vm0, %v42_v12 }
  0x1a   :  { %1021 = vmatmul.mubr.msk.f32.gmra.mxu0 %vm61_vm0, %v43_v13  ;;  %v871_v13 = vld [vmem:[%s1390_s4] ss:$0 sm:$0xff] }
  0x1b   :  { %1023 = vmatprep.mubr.msk.f32.mxu0 %vm61_vm0, %v44_v14 }
  0x1e   :  { %1024 = vmatmul.mubr.msk.f32.gmra.mxu0 %vm61_vm0, %v45_v15 }
  0x1f   :  { %1026 = vmatprep.mubr.msk.f32.mxu0 %vm61_vm0, %v46_v16 }
  0x22   :  { %1027 = vmatmul.mubr.msk.f32.gmra.mxu0 %vm61_vm0, %v47_v17 }
  0x23   :  { %1029 = vmatprep.mubr.msk.f32.mxu0 %vm61_vm0, %v48_v18 }
  0x26   :  { %1030 = vmatmul.mubr.msk.f32.gmra.mxu0 %vm61_vm0, %v49_v19 }
  0xca   :  { %v1010_v29 = vpop.f32.mrf.mxu0 }
  0xcb   :  { %v182_v30 = vadd.f32 %v1010_v29, %v854_v28 }
  0xcc   :  { %v176_v31 = vpop.f32.mrf.mxu0 }
  0xcd   :  { %v177_v32 = vadd.f32 %v854_v28, %v176_v31  ;;  %v256_v35 = vmax.f32 %v182_v30, 0.0 }
  0xce   :  { %v1013_v33 = vpop.f32.mrf.mxu0 }
  0xcf   :  { %v255_v34 = vmax.f32 %v177_v32, 0.0  ;;  %v192_v36 = vadd.f32 %v1013_v33, %v854_v28 }
  0xd0   :  { %v186_v37 = vpop.f32.mrf.mxu0 }
  0xd1   :  { %v187_v38 = vadd.f32 %v854_v28, %v186_v37  ;;  %1040 = vmatprep.mubr.msk.f32.mxu1 %vm61_vm0, %v255_v34  ;;  %v258_v41 = vmax.f32 %v192_v36, 0.0 }
  0xd2   :  { %v1016_v39 = vpop.f32.mrf.mxu0  ;;  %1041 = vmatmul.mubr.msk.f32.vlgmr.msra.gmra.mxu1 %vm61_vm0, %v256_v35 }
  0xd3   :  { %v257_v40 = vmax.f32 %v187_v38, 0.0  ;;  %v202_v42 = vadd.f32 %v1016_v39, %v854_v28 }
  0xd4   :  { %v196_v43 = vpop.f32.mrf.mxu0 }
  0xd5   :  { %v197_v44 = vadd.f32 %v854_v28, %v196_v43  ;;  %1043 = vmatprep.mubr.msk.f32.mxu1 %vm61_vm0, %v257_v40  ;;  %v260_v47 = vmax.f32 %v202_v42, 0.0 }
  0xd6   :  { %v1019_v45 = vpop.f32.mrf.mxu0  ;;  %1044 = vmatmul.mubr.msk.f32.gmra.mxu1 %vm61_vm0, %v258_v41 }
  0xd7   :  { %v259_v46 = vmax.f32 %v197_v44, 0.0  ;;  %v212_v48 = vadd.f32 %v1019_v45, %v854_v28 }
  0xd8   :  { %v206_v49 = vpop.f32.mrf.mxu0 }
  0xd9   :  { %v207_v50 = vadd.f32 %v854_v28, %v206_v49  ;;  %1046 = vmatprep.mubr.msk.f32.mxu1 %vm61_vm0, %v259_v46  ;;  %v262_v53 = vmax.f32 %v212_v48, 0.0 }
  0xda   :  { %v1022_v51 = vpop.f32.mrf.mxu0  ;;  %1047 = vmatmul.mubr.msk.f32.gmra.mxu1 %vm61_vm0, %v260_v47 }
  0xdb   :  { %v261_v52 = vmax.f32 %v207_v50, 0.0  ;;  %v222_v54 = vadd.f32 %v1022_v51, %v854_v28 }
  0xdc   :  { %v216_v55 = vpop.f32.mrf.mxu0 }
  0xdd   :  { %v217_v56 = vadd.f32 %v854_v28, %v216_v55  ;;  %1049 = vmatprep.mubr.msk.f32.mxu1 %vm61_vm0, %v261_v52  ;;  %v264_v59 = vmax.f32 %v222_v54, 0.0 }
  0xde   :  { %v1025_v57 = vpop.f32.mrf.mxu0  ;;  %1050 = vmatmul.mubr.msk.f32.gmra.mxu1 %vm61_vm0, %v262_v53 }
  0xdf   :  { %v263_v58 = vmax.f32 %v217_v56, 0.0  ;;  %v232_v60 = vadd.f32 %v1025_v57, %v854_v28 }
  0xe0   :  { %v226_v61 = vpop.f32.mrf.mxu0 }
  0xe1   :  { %v227_v62 = vadd.f32 %v854_v28, %v226_v61  ;;  %1052 = vmatprep.mubr.msk.f32.mxu1 %vm61_vm0, %v263_v58  ;;  %v266_v1 = vmax.f32 %v232_v60, 0.0 }
  0xe2   :  { %v1028_v63 = vpop.f32.mrf.mxu0  ;;  %1053 = vmatmul.mubr.msk.f32.gmra.mxu1 %vm61_vm0, %v264_v59 }
  0xe3   :  { %v265_v0 = vmax.f32 %v227_v62, 0.0  ;;  %v242_v2 = vadd.f32 %v1028_v63, %v854_v28  ;;  %v1139_v62 = vmov 0.0   ;;  %v1141_v63 = vmov 0  }
  0xe4   :  { %v236_v3 = vpop.f32.mrf.mxu0  ;;  %1096 = vmatprep.subr.mxu1 %v1139_v62  ;;  %1134 = vset.pattern.permute.xlu0 %v1141_v63 }
  0xe5   :  { %v237_v4 = vadd.f32 %v854_v28, %v236_v3  ;;  %1055 = vmatprep.mubr.msk.f32.mxu1 %vm61_vm0, %v265_v0  ;;  %v268_v7 = vmax.f32 %v242_v2, 0.0  ;;  %v14_v0 = vstv %s1391_s8 }
  0xe6   :  { %v1031_v5 = vpop.f32.mrf.mxu0  ;;  %1056 = vmatmul.mubr.msk.f32.gmra.mxu1 %vm61_vm0, %v266_v1  ;;  %15 = vst [vmem:[#allocation2] sm:$0x1] %v14_v0 }
  0xe7   :  { %v267_v6 = vmax.f32 %v237_v4, 0.0  ;;  %v252_v8 = vadd.f32 %v1031_v5, %v854_v28 }
  0xe8   :  { %v246_v9 = vpop.f32.mrf.mxu0 }
  0xe9   :  { %v247_v10 = vadd.f32 %v854_v28, %v246_v9  ;;  %1058 = vmatprep.mubr.msk.f32.mxu1 %vm61_vm0, %v267_v6  ;;  %v270_v12 = vmax.f32 %v252_v8, 0.0 }
  0xea   :  { %1059 = vmatmul.mubr.msk.f32.gmra.mxu1 %vm61_vm0, %v268_v7 }
  0xeb   :  { %v269_v11 = vmax.f32 %v247_v10, 0.0 }
  0xed   :  { %1061 = vmatprep.mubr.msk.f32.mxu1 %vm61_vm0, %v269_v11  ;;  %v712_v1 = vld [vmem:[#allocation2] sm:$0x1] }
  0xee   :  { %1062 = vmatmul.mubr.msk.f32.gmra.mxu1 %vm61_vm0, %v270_v12  ;;  %715 = vperm.xlu0 %1134, %v712_v1  }
  0xef   :  { %1128 = vmatprep.mubr.msk.f32.mxu1 %vm1140_vm1, %v1139_v62 }
 0x192   :  { %v1042_v14 = vpop.f32.mrf.mxu1 }
 0x193   :  { %v402_v15 = vadd.f32 %v1042_v14, %v871_v13 }
 0x194   :  { %v396_v16 = vpop.f32.mrf.mxu1 }
 0x195   :  { %v397_v17 = vadd.f32 %v871_v13, %v396_v16  ;;  %v476_v20 = vmax.f32 %v402_v15, 0.0  ;;  %v888_v16 = vld [vmem:[%s1392_s6] ss:$0 sm:$0xff] }
 0x196   :  { %v1045_v18 = vpop.f32.mrf.mxu1 }
 0x197   :  { %v475_v19 = vmax.f32 %v397_v17, 0.0  ;;  %v412_v21 = vadd.f32 %v1045_v18, %v871_v13 }
 0x198   :  { %v406_v22 = vpop.f32.mrf.mxu1 }
 0x199   :  { %v407_v23 = vadd.f32 %v871_v13, %v406_v22  ;;  %1072 = vmatprep.mubr.msk.f32.mxu0 %vm61_vm0, %v475_v19  ;;  %v478_v26 = vmax.f32 %v412_v21, 0.0 }
 0x19a   :  { %v1048_v24 = vpop.f32.mrf.mxu1  ;;  %1073 = vmatmul.mubr.msk.f32.vlgmr.msra.gmra.mxu0 %vm61_vm0, %v476_v20 }
 0x19b   :  { %v477_v25 = vmax.f32 %v407_v23, 0.0  ;;  %v422_v27 = vadd.f32 %v1048_v24, %v871_v13 }
 0x19c   :  { %v416_v28 = vpop.f32.mrf.mxu1 }
 0x19d   :  { %v417_v29 = vadd.f32 %v871_v13, %v416_v28  ;;  %1075 = vmatprep.mubr.msk.f32.mxu0 %vm61_vm0, %v477_v25  ;;  %v480_v32 = vmax.f32 %v422_v27, 0.0 }
 0x19e   :  { %v1051_v30 = vpop.f32.mrf.mxu1  ;;  %1076 = vmatmul.mubr.msk.f32.gmra.mxu0 %vm61_vm0, %v478_v26 }
 0x19f   :  { %v479_v31 = vmax.f32 %v417_v29, 0.0  ;;  %v432_v33 = vadd.f32 %v1051_v30, %v871_v13 }
 0x1a0   :  { %v426_v34 = vpop.f32.mrf.mxu1 }
 0x1a1   :  { %v427_v35 = vadd.f32 %v871_v13, %v426_v34  ;;  %1078 = vmatprep.mubr.msk.f32.mxu0 %vm61_vm0, %v479_v31  ;;  %v482_v38 = vmax.f32 %v432_v33, 0.0 }
 0x1a2   :  { %v1054_v36 = vpop.f32.mrf.mxu1  ;;  %1079 = vmatmul.mubr.msk.f32.gmra.mxu0 %vm61_vm0, %v480_v32 }
 0x1a3   :  { %v481_v37 = vmax.f32 %v427_v35, 0.0  ;;  %v442_v39 = vadd.f32 %v1054_v36, %v871_v13 }
 0x1a4   :  { %v436_v40 = vpop.f32.mrf.mxu1 }
 0x1a5   :  { %v437_v41 = vadd.f32 %v871_v13, %v436_v40  ;;  %1081 = vmatprep.mubr.msk.f32.mxu0 %vm61_vm0, %v481_v37  ;;  %v484_v44 = vmax.f32 %v442_v39, 0.0 }
 0x1a6   :  { %v1057_v42 = vpop.f32.mrf.mxu1  ;;  %1082 = vmatmul.mubr.msk.f32.gmra.mxu0 %vm61_vm0, %v482_v38 }
 0x1a7   :  { %v483_v43 = vmax.f32 %v437_v41, 0.0  ;;  %v452_v45 = vadd.f32 %v1057_v42, %v871_v13 }
 0x1a8   :  { %v446_v46 = vpop.f32.mrf.mxu1 }
 0x1a9   :  { %v447_v47 = vadd.f32 %v871_v13, %v446_v46  ;;  %1084 = vmatprep.mubr.msk.f32.mxu0 %vm61_vm0, %v483_v43  ;;  %v486_v50 = vmax.f32 %v452_v45, 0.0 }
 0x1aa   :  { %v1060_v48 = vpop.f32.mrf.mxu1  ;;  %1085 = vmatmul.mubr.msk.f32.gmra.mxu0 %vm61_vm0, %v484_v44 }
 0x1ab   :  { %v485_v49 = vmax.f32 %v447_v47, 0.0  ;;  %v462_v51 = vadd.f32 %v1060_v48, %v871_v13 }
 0x1ac   :  { %v456_v52 = vpop.f32.mrf.mxu1 }
 0x1ad   :  { %v457_v53 = vadd.f32 %v871_v13, %v456_v52  ;;  %1087 = vmatprep.mubr.msk.f32.mxu0 %vm61_vm0, %v485_v49  ;;  %v488_v56 = vmax.f32 %v462_v51, 0.0  ;;  %v711_v51 = vld [vmem:[%s1393_s7] sm:$0x1]  ;;  %v718_v52 = vlaneseq }
 0x1ae   :  { %v1063_v54 = vpop.f32.mrf.mxu1  ;;  %1088 = vmatmul.mubr.msk.f32.gmra.mxu0 %vm61_vm0, %v486_v50 }
 0x1af   :  { %v487_v55 = vmax.f32 %v457_v53, 0.0  ;;  %v472_v57 = vadd.f32 %v1063_v54, %v871_v13  ;;  %v719_v53 = vshrl.u32 %v718_v52, 7 }
 0x1b0   :  { %v466_v58 = vpop.f32.mrf.mxu1 }
 0x1b1   :  { %v467_v59 = vadd.f32 %v871_v13, %v466_v58  ;;  %1090 = vmatprep.mubr.msk.f32.mxu0 %vm61_vm0, %v487_v55  ;;  %v490_v61 = vmax.f32 %v472_v57, 0.0  ;;  %v720_v54 = vsub.s32 0, %v719_v53  ;;  %v716_v55 = vpop.permute.xlu0 %715 }
 0x1b2   :  { %1091 = vmatmul.mubr.msk.f32.gmra.mxu0 %vm61_vm0, %v488_v56 }
 0x1b3   :  { %v489_v60 = vmax.f32 %v467_v59, 0.0  ;;  %v721_v56 = vrot.slane %v716_v55, %v720_v54 }
 0x1b5   :  { %1093 = vmatprep.mubr.msk.f32.mxu0 %vm61_vm0, %v489_v60 }
 0x1b6   :  { %1094 = vmatmul.mubr.msk.f32.gmra.mxu0 %vm61_vm0, %v490_v61 }
 0x25a   :  { %v1335_v2 = vpop.f32.mrf.mxu0 }
 0x25b   :  { %v622_v46 = vadd.f32 %v1335_v2, %v888_v16 }
 0x25c   :  { %v1337_v3 = vpop.f32.mrf.mxu0 }
 0x25d   :  { %v696_v48 = vmax.f32 %v622_v46, 0.0  ;;  %v617_v49 = vadd.f32 %v888_v16, %v1337_v3 }
 0x25e   :  { %v1077_v4 = vpop.f32.mrf.mxu0 }
 0x25f   :  { %v632_v42 = vadd.f32 %v1077_v4, %v888_v16  ;;  %v695_v50 = vmax.f32 %v617_v49, 0.0 }
 0x260   :  { %v1339_v5 = vpop.f32.mrf.mxu0 }
 0x261   :  { %v698_v44 = vmax.f32 %v632_v42, 0.0  ;;  %v627_v45 = vadd.f32 %v888_v16, %v1339_v5 }
 0x262   :  { %v1080_v6 = vpop.f32.mrf.mxu0 }
 0x263   :  { %v642_v38 = vadd.f32 %v1080_v6, %v888_v16  ;;  %v697_v47 = vmax.f32 %v627_v45, 0.0 }
 0x264   :  { %v636_v7 = vpop.f32.mrf.mxu0 }
 0x265   :  { %v700_v40 = vmax.f32 %v642_v38, 0.0  ;;  %v637_v41 = vadd.f32 %v888_v16, %v636_v7 }
 0x266   :  { %v1083_v8 = vpop.f32.mrf.mxu0 }
 0x267   :  { %v652_v34 = vadd.f32 %v1083_v8, %v888_v16  ;;  %v699_v43 = vmax.f32 %v637_v41, 0.0 }
 0x268   :  { %v646_v9 = vpop.f32.mrf.mxu0 }
 0x269   :  { %v702_v36 = vmax.f32 %v652_v34, 0.0  ;;  %v647_v37 = vadd.f32 %v888_v16, %v646_v9 }
 0x26a   :  { %v1086_v10 = vpop.f32.mrf.mxu0 }
 0x26b   :  { %v662_v30 = vadd.f32 %v1086_v10, %v888_v16  ;;  %v701_v39 = vmax.f32 %v647_v37, 0.0 }
 0x26c   :  { %v656_v11 = vpop.f32.mrf.mxu0 }
 0x26d   :  { %v704_v32 = vmax.f32 %v662_v30, 0.0  ;;  %v657_v33 = vadd.f32 %v888_v16, %v656_v11 }
 0x26e   :  { %v1089_v12 = vpop.f32.mrf.mxu0 }
 0x26f   :  { %v672_v26 = vadd.f32 %v1089_v12, %v888_v16  ;;  %v703_v35 = vmax.f32 %v657_v33, 0.0 }
 0x270   :  { %v666_v13 = vpop.f32.mrf.mxu0 }
 0x271   :  { %v706_v28 = vmax.f32 %v672_v26, 0.0  ;;  %v667_v29 = vadd.f32 %v888_v16, %v666_v13 }
 0x272   :  { %v1092_v14 = vpop.f32.mrf.mxu0 }
 0x273   :  { %v682_v22 = vadd.f32 %v1092_v14, %v888_v16  ;;  %v705_v31 = vmax.f32 %v667_v29, 0.0 }
 0x274   :  { %v676_v15 = vpop.f32.mrf.mxu0 }
 0x275   :  { %v708_v24 = vmax.f32 %v682_v22, 0.0  ;;  %v677_v25 = vadd.f32 %v888_v16, %v676_v15 }
 0x276   :  { %v1095_v17 = vpop.f32.mrf.mxu0 }
 0x277   :  { %v692_v18 = vadd.f32 %v1095_v17, %v888_v16  ;;  %v707_v27 = vmax.f32 %v677_v25, 0.0 }
 0x278   :  { %v686_v19 = vpop.f32.mrf.mxu0 }
 0x279   :  { %v710_v20 = vmax.f32 %v692_v18, 0.0  ;;  %v687_v21 = vadd.f32 %v888_v16, %v686_v19 }
 0x27b   :  { %1097 = vmatpush3.xpose.msk.msra.mxu1 %vm61_vm0, %v710_v20  ;;  %v709_v23 = vmax.f32 %v687_v21, 0.0 }
 0x27c   :  { %1098 = vmatprep.subr.mxu1 %v1139_v62 }
 0x27f   :  { %1099 = vmatpush3.xpose.msk.msra.mxu1 %vm61_vm0, %v709_v23 }
 0x280   :  { %1100 = vmatprep.subr.mxu1 %v1139_v62 }
 0x283   :  { %1101 = vmatpush3.xpose.msk.msra.mxu1 %vm61_vm0, %v708_v24 }
 0x284   :  { %1102 = vmatprep.subr.mxu1 %v1139_v62 }
 0x287   :  { %1103 = vmatpush3.xpose.msk.msra.mxu1 %vm61_vm0, %v707_v27 }
 0x288   :  { %1104 = vmatprep.subr.mxu1 %v1139_v62 }
 0x28b   :  { %1105 = vmatpush3.xpose.msk.msra.mxu1 %vm61_vm0, %v706_v28 }
 0x28c   :  { %1106 = vmatprep.subr.mxu1 %v1139_v62 }
 0x28f   :  { %1107 = vmatpush3.xpose.msk.msra.mxu1 %vm61_vm0, %v705_v31 }
 0x290   :  { %1108 = vmatprep.subr.mxu1 %v1139_v62 }
 0x293   :  { %1109 = vmatpush3.xpose.msk.msra.mxu1 %vm61_vm0, %v704_v32 }
 0x294   :  { %1110 = vmatprep.subr.mxu1 %v1139_v62 }
 0x297   :  { %1111 = vmatpush3.xpose.msk.msra.mxu1 %vm61_vm0, %v703_v35 }
 0x298   :  { %1112 = vmatprep.subr.mxu1 %v1139_v62 }
 0x29b   :  { %1113 = vmatpush3.xpose.msk.msra.mxu1 %vm61_vm0, %v702_v36 }
 0x29c   :  { %1114 = vmatprep.subr.mxu1 %v1139_v62 }
 0x29f   :  { %1115 = vmatpush3.xpose.msk.msra.mxu1 %vm61_vm0, %v701_v39 }
 0x2a0   :  { %1116 = vmatprep.subr.mxu1 %v1139_v62 }
 0x2a3   :  { %1117 = vmatpush3.xpose.msk.msra.mxu1 %vm61_vm0, %v700_v40 }
 0x2a4   :  { %1118 = vmatprep.subr.mxu1 %v1139_v62 }
 0x2a7   :  { %1119 = vmatpush3.xpose.msk.msra.mxu1 %vm61_vm0, %v699_v43 }
 0x2a8   :  { %1120 = vmatprep.subr.mxu1 %v1139_v62 }
 0x2ab   :  { %1121 = vmatpush3.xpose.msk.msra.mxu1 %vm61_vm0, %v698_v44 }
 0x2ac   :  { %1122 = vmatprep.subr.mxu1 %v1139_v62 }
 0x2af   :  { %1123 = vmatpush3.xpose.msk.msra.mxu1 %vm61_vm0, %v697_v47 }
 0x2b0   :  { %1124 = vmatprep.subr.mxu1 %v1139_v62 }
 0x2b3   :  { %1125 = vmatpush3.xpose.msk.msra.mxu1 %vm61_vm0, %v696_v48 }
 0x2b4   :  { %1126 = vmatprep.subr.mxu1 %v1139_v62 }
 0x2b7   :  { %1127 = vmatpush3.xpose.msk.msra.mxu1 %vm61_vm0, %v695_v50 }
 0x2ba   :  { %1129 = vmatmul.mubr.msk.f32.vlgmr.msra.gmra.mxu1 %vm61_vm0, %v711_v51 }
 0x37a   :  { %v839_v57 = vpop.f32.mrf.mxu1 }
 0x37b   :  { %v840_v58 = vadd.f32 %v839_v57, %v721_v56 }
 0x37c   :  { %v1130_v59 = vpop.f32.mrf.mxu1 }
 0x37d   :  { %v922_v60 = vmul.f32 -1.442695, %v840_v58 }
 0x37f   :  { %1135 = vpow2.f32 %v922_v60 }
 0x38c   :  { %v1136_v61 = vpop.eup %1135 }
 0x38d   :  { %v846_v62 = vadd.f32 1.0, %v1136_v61 }
 0x38f   :  { %1137 = vrcp.f32 %v846_v62 }
 0x39c   :  { %v1138_v63 = vpop.eup %1137 }
 0x39d   :  { %849 = vst [vmem:[%s1394_s9] sm:$0x1] %v1138_v63 }

</bundles_post_ra>
